<compile_context>
chip_gen: v7x
topology: tpu7x:2x2x1
jax: 0.10.0
libtpu: 0.0.40
codegen_flags: <defaults>
</compile_context>

<pallas_src>
import jax
import jax.numpy as jnp
from jax.experimental import pallas as pl
from jax.experimental.pallas import tpu as pltpu


def _sigmoid(x):
    # Exactly one EUP transcendental (tanh) + cheap VPU mul/add per gate; avoids a
    # possible exp + divide lowering, which matters on v5e's single EUP.
    return 0.5 * jnp.tanh(0.5 * x) + 0.5


def _make_kernel(hidden_size, hidden_out, n_branches, has_input,
                 piece_offsets, piece_sizes):
    ob = hidden_out // hidden_size

    def kernel(*refs):
        idx = 0
        h_refs = refs[idx:idx + n_branches]; idx += n_branches
        x_ref = refs[idx] if has_input else None
        idx += 1 if has_input else 0
        w_ref = refs[idx]; idx += 1
        b_ref = refs[idx]; idx += 1
        c_refs = refs[idx:idx + n_branches]; idx += n_branches
        h_out, c_out = refs[idx], refs[idx + 1]

        pieces = list(h_refs) + ([x_ref] if has_input else [])

        # Per-piece MXU dots accumulated into one f32 z.  Each f32 activation tile is
        # cast to bf16 on the VPU right before the dot (no wrapper-side concat/cast
        # HBM round-trip); the bf16 weight is statically sliced at aligned row
        # offsets so every dot feeds the MXU lane-dense.
        z = None
        for ref, off, sz in zip(pieces, piece_offsets, piece_sizes):
            part = jnp.dot(ref[...].astype(jnp.bfloat16),
                           w_ref[off:off + sz, :],
                           preferred_element_type=jnp.float32)
            z = part if z is None else z + part
        z = z + b_ref[...]                       # (tm, (Nb+3)*Hout), f32

        H = hidden_out                           # 128-aligned gate slices
        a = z[:, 0:H]
        i = z[:, H:2 * H]
        o = z[:, 2 * H:3 * H]

        # Gating math stays f32 (v5e VPU/EUP have no bf16 path).
        c = jnp.tanh(a) * _sigmoid(i)
        for j in range(n_branches):              # static unroll over branches
            f = z[:, (3 + j) * H:(4 + j) * H]
            cj = c_refs[j][...]
            if ob > 1:
                # torch .repeat(..., Ob) done in VMEM: the raw (B, H) cell state is
                # DMA'd once instead of Ob replicated copies from HBM.
                cj = jnp.tile(cj, (1, ob))
            c = c + _sigmoid(f) * cj
        h = _sigmoid(o) * jnp.tanh(c)

        h_out[...] = h.astype(h_out.dtype)
        c_out[...] = c.astype(c_out.dtype)

    return kernel


def _chip_info():
    """(num_tensorcores, physical VMEM bytes per core) for the local TPU."""
    kind = ""
    try:
        kind = jax.devices()[0].device_kind.lower()
    except Exception:                 # no device info available: fall back to defaults
        pass
    # v4 / v5p (megacore) and v7x expose 2 TensorCores per chip; v5e / v6e expose 1.
    num_tc = 2 if any(tag in kind for tag in ("v4", "v5p", "7x", "v7")) else 1
    vmem_cap = None
    try:
        vmem_cap = getattr(pltpu.get_tpu_info(), "vmem_capacity_bytes", None)
    except Exception:
        vmem_cap = None
    if not vmem_cap:
        vmem_cap = (64 if ("7x" in kind or "v7" in kind) else 128) * 1024 * 1024
    return num_tc, int(vmem_cap)


def _pick_tm(batch, d_in, d_tot, hidden_size, n_branches, hidden_out,
             num_tc, vmem_budget, w_bytes, h_bytes):
    """Batch tile size: biggest tile that fits VMEM; only split when it pays."""

    def fits(tm):
        z = tm * d_tot * 4                                 # compiler f32 z intermediate
        acts = 2 * tm * d_in * 4                           # double-buffered h/x tiles (f32)
        cells = 2 * tm * n_branches * hidden_size * 4      # double-buffered c_j tiles
        outs = 2 * tm * hidden_out * (h_bytes + 4)         # double-buffered h/c outputs
        resident = 2 * w_bytes + 2 * d_tot * 4             # weight + bias buffers
        return resident + z + acts + cells + outs <= vmem_budget

    cands = [c for c in (1024, 512, 256, 128, 64, 32, 24, 16, 8)
             if c < batch and batch % c == 0]
    if num_tc >= 2:
        # Megacore split only pays when each grid step still feeds the MXU with
        # >=128 rows; two tiny matmuls on two cores lose to one matmul on one core.
        for c in cands:
            if c >= 128 and fits(c):
                return c
    # 1-TC chips (v5e / v6e) or small batches: one full-batch tile avoids the
    # ~0.35us/step serial grid-loop overhead.
    if fits(batch):
        return batch
    for c in cands:
        if fits(c):
            return c
    # TODO(synk): if the resident weight alone blows the VMEM budget (huge hidden /
    # many branches), add a K (Din) reduction grid axis marked "arbitrary" with an
    # f32 accumulator scratch instead of keeping the full weight resident.
    return batch


def multi_input_lstm(hs, cs, x_in, w_fc_t, b_fc, *, hidden_size,
                     output_branches=1, tm=None, h_dtype=jnp.float32):
    """MultiInputLSTM forward.

    hs, cs : lists of (B, hidden_size) f32 hidden / cell states, one per branch.
    x_in   : optional (B, in_feature_size) f32 extra input, or None.
    w_fc_t : (Din, Dtot) FC weight, pre-transposed + bf16-cast ONCE at init time;
             Din = hidden*len(hs) + in_feat, Dtot = (len(hs)+3)*hidden*Ob.
    b_fc   : (Dtot,) f32 FC bias.
    h_dtype: dtype of the returned h. f32 matches the module exactly (default);
             jnp.bfloat16 halves h writeback when h only feeds the next bf16 dot.
    returns (h, c): h is (B, hidden*Ob) h_dtype, c is (B, hidden*Ob) f32.
    """
    n_branches = len(hs)
    assert len(cs) == n_branches and n_branches >= 1
    B = hs[0].shape[0]
    hidden_out = hidden_size * output_branches
    d_tot = (n_branches + 3) * hidden_out

    # Lane-dense design assumption: every gate slice z[:, k*Hout:(k+1)*Hout] and both
    # outputs must be 128-lane aligned, otherwise gate slices cross vreg boundaries
    # (XLU relayouts) and stores degrade to masked partial writes.
    assert hidden_out % 128 == 0, (
        "hidden_size * output_branches must be a multiple of 128 (pad if needed)")

    piece_sizes = [hidden_size] * n_branches
    if x_in is not None:
        piece_sizes.append(x_in.shape[-1])
    piece_offsets, off = [], 0
    for sz in piece_sizes:
        piece_offsets.append(off)
        off += sz
    d_in = off
    assert w_fc_t.shape == (d_in, d_tot)
    assert w_fc_t.dtype == jnp.bfloat16

    b2d = jnp.asarray(b_fc, jnp.float32).reshape(1, d_tot)

    num_tc, vmem_cap = _chip_info()
    # ~75% of physical VMEM (~48 MiB on v7x, ~96 MiB on v5e/v6e) leaves headroom for
    # Mosaic internal scratch instead of hardcoding v7x's entire 64 MiB.
    vmem_limit = int(vmem_cap * 3 // 4)

    h_bytes = jnp.dtype(h_dtype).itemsize
    w_bytes = d_in * d_tot * 2
    if tm is None:
        tm = _pick_tm(B, d_in, d_tot, hidden_size, n_branches, hidden_out,
                      num_tc, vmem_limit, w_bytes, h_bytes)
    assert B % tm == 0

    kernel = _make_kernel(hidden_size, hidden_out, n_branches, x_in is not None,
                          piece_offsets, piece_sizes)

    def row_spec(width):
        return pl.BlockSpec((tm, width), lambda i: (i, 0))

    in_specs = [row_spec(hidden_size) for _ in range(n_branches)]       # h_j tiles
    if x_in is not None:
        in_specs.append(row_spec(piece_sizes[-1]))                      # x tile
    in_specs += [
        # Constant index maps: weight / bias are DMA'd into VMEM once and stay
        # resident (the pipeline skips re-fetch when the block index is unchanged).
        pl.BlockSpec((d_in, d_tot), lambda i: (0, 0)),
        pl.BlockSpec((1, d_tot), lambda i: (0, 0)),
    ]
    in_specs += [row_spec(hidden_size) for _ in range(n_branches)]      # raw c_j tiles

    out_specs = [
        pl.BlockSpec((tm, hidden_out), lambda i: (i, 0)),   # h (lane-dense)
        pl.BlockSpec((tm, hidden_out), lambda i: (i, 0)),   # c (lane-dense)
    ]

    cost = pl.CostEstimate(
        flops=2 * B * d_in * d_tot,
        transcendentals=(4 + n_branches) * B * hidden_out,
        bytes_accessed=(B * d_in * 4 + w_bytes + d_tot * 4
                        + B * n_branches * hidden_size * 4
                        + B * hidden_out * (h_bytes + 4)),
    )

    # TODO(synk): when this cell is driven from a per-timestep scan, fuse the time
    # loop into the kernel (time as an "arbitrary" grid axis with h/c held in VMEM
    # scratch) or use a cross-call weight-prefetch future so the bf16 weight is not
    # re-fetched from HBM every step.
    call = pl.pallas_call(
        kernel,
        out_shape=(jax.ShapeDtypeStruct((B, hidden_out), h_dtype),
                   jax.ShapeDtypeStruct((B, hidden_out), jnp.float32)),
        grid=(B // tm,),
        in_specs=in_specs,
        out_specs=out_specs,
        compiler_params=pltpu.CompilerParams(
            dimension_semantics=("parallel",),
            vmem_limit_bytes=vmem_limit,
        ),
        cost_estimate=cost,
    )

    args = list(hs)
    if x_in is not None:
        args.append(x_in)
    args += [w_fc_t, b2d]
    args += list(cs)
    return call(*args)


def _ref_gates(z, cs, hidden_out, n_branches, output_branches):
    a = z[:, 0:hidden_out]
    i = z[:, hidden_out:2 * hidden_out]
    o = z[:, 2 * hidden_out:3 * hidden_out]
    c = jnp.tanh(a) * jax.nn.sigmoid(i)
    for j in range(n_branches):
        f = z[:, (3 + j) * hidden_out:(4 + j) * hidden_out]
        reps = (1,) * (cs[j].ndim - 1) + (output_branches,)
        c = c + jax.nn.sigmoid(f) * jnp.tile(cs[j], reps)
    h = jax.nn.sigmoid(o) * jnp.tanh(c)
    return h, c


if __name__ == "__main__":
    # Small but lane-aligned shapes: hidden=128 keeps every gate slice and both
    # outputs lane-dense; batch=32 runs as a single full-batch tile on 1-TC chips.
    batch = 32
    hidden = 128
    in_feature_size = 128
    input_branches = 2
    output_branches = 1

    d_in = hidden * input_branches + in_feature_size
    d_tot = (input_branches + 3) * hidden * output_branches

    key = jax.random.PRNGKey(0)
    ks = jax.random.split(key, 2 * input_branches + 3)
    hs = [jax.random.normal(ks[j], (batch, hidden), jnp.float32)
          for j in range(input_branches)]
    cs = [jax.random.normal(ks[input_branches + j], (batch, hidden), jnp.float32)
          for j in range(input_branches)]
    x_in = jax.random.normal(ks[2 * input_branches], (batch, in_feature_size), jnp.float32)

    # PyTorch Linear convention: weight (out_features, in_features), bias (out_features,)
    w_fc = jax.random.normal(ks[2 * input_branches + 1], (d_tot, d_in), jnp.float32) * (d_in ** -0.5)
    b_fc = jax.random.normal(ks[2 * input_branches + 2], (d_tot,), jnp.float32) * 0.5

    # Init-time weight prep (hoisted out of the per-step path): transpose ONCE to
    # (Din, Dtot) and cast to bf16 ONCE.
    w_fc_t = jnp.asarray(w_fc.T, dtype=jnp.bfloat16)

    h, c = multi_input_lstm(hs, cs, x_in, w_fc_t, b_fc,
                            hidden_size=hidden, output_branches=output_branches)
    h = jax.block_until_ready(h)
    c = jax.block_until_ready(c)
    assert h.shape == (batch, hidden * output_branches)
    assert c.shape == (batch, hidden * output_branches)

    hidden_out = hidden * output_branches
    fc_in_f32 = jnp.concatenate(hs + [x_in], axis=-1)

    # (1) Exact module semantics in f32 (loose tol: kernel rounds matmul operands to bf16).
    z_f32 = fc_in_f32 @ w_fc.T + b_fc
    h_ref, c_ref = _ref_gates(z_f32, cs, hidden_out, input_branches, output_branches)
    assert jnp.allclose(h.astype(jnp.float32), h_ref, atol=1e-1, rtol=5e-2)
    assert jnp.allclose(c, c_ref, atol=1e-1, rtol=5e-2)

    # (2) Reference with the kernel's own numerics (bf16 operands, f32 accumulate): tight tol.
    z_bf16 = jnp.dot(fc_in_f32.astype(jnp.bfloat16), w_fc_t,
                     preferred_element_type=jnp.float32) + b_fc
    h_ref2, c_ref2 = _ref_gates(z_bf16, cs, hidden_out, input_branches, output_branches)
    assert jnp.allclose(h.astype(jnp.float32), h_ref2, atol=5e-3, rtol=5e-3)
    assert jnp.allclose(c, c_ref2, atol=5e-3, rtol=5e-3)

    print("KERNEL_OK")
</pallas_src>

<mosaic_0001>
module attributes {stable_mosaic.version = 11 : i64} {
  func.func @kernel(%arg0: i32, %arg1: memref<32x128xf32, #tpu.memory_space<vmem>>, %arg2: memref<32x128xf32, #tpu.memory_space<vmem>>, %arg3: memref<32x128xf32, #tpu.memory_space<vmem>>, %arg4: memref<384x640xbf16, #tpu.memory_space<vmem>>, %arg5: memref<1x640xf32, #tpu.memory_space<vmem>>, %arg6: memref<32x128xf32, #tpu.memory_space<vmem>>, %arg7: memref<32x128xf32, #tpu.memory_space<vmem>>, %arg8: memref<32x128xf32, #tpu.memory_space<vmem>>, %arg9: memref<32x128xf32, #tpu.memory_space<vmem>>) attributes {dimension_semantics = [#tpu.dimension_semantics<parallel>], iteration_bounds = array<i64: 1>, scalar_prefetch = 0 : i64, scratch_operands = 0 : i64, tpu.core_type = #tpu.core_type<tc>, window_params = [{transform_indices = @transform_0, window_bounds = array<i64: 32, 128>}, {transform_indices = @transform_1, window_bounds = array<i64: 32, 128>}, {transform_indices = @transform_2, window_bounds = array<i64: 32, 128>}, {pipeline_mode = #tpu.pipeline_mode<synchronous>, transform_indices = @transform_3, window_bounds = array<i64: 384, 640>}, {pipeline_mode = #tpu.pipeline_mode<synchronous>, transform_indices = @transform_4, window_bounds = array<i64: 1, 640>}, {transform_indices = @transform_5, window_bounds = array<i64: 32, 128>}, {transform_indices = @transform_6, window_bounds = array<i64: 32, 128>}, {transform_indices = @transform_7, window_bounds = array<i64: 32, 128>}, {transform_indices = @transform_8, window_bounds = array<i64: 32, 128>}]} {
    %c0 = arith.constant 0 : index
    %c0_0 = arith.constant 0 : index
    %0 = vector.load %arg1[%c0, %c0_0] : memref<32x128xf32, #tpu.memory_space<vmem>>, vector<32x128xf32>
    %1 = arith.truncf %0 : vector<32x128xf32> to vector<32x128xbf16>
    %c0_1 = arith.constant 0 : index
    %c0_2 = arith.constant 0 : index
    %2 = vector.load %arg4[%c0_1, %c0_2] : memref<384x640xbf16, #tpu.memory_space<vmem>>, vector<128x640xbf16>
    %cst = arith.constant dense<0.000000e+00> : vector<32x640xf32>
    %3 = tpu.matmul %1, %2, %cst {dimension_numbers = #tpu.dot_dimension_numbers<[1], [0], [0], [1], [0, 0, 1, 1], [], []>} : vector<32x128xbf16>, vector<128x640xbf16>, vector<32x640xf32> -> vector<32x640xf32>
    %c0_3 = arith.constant 0 : index
    %c0_4 = arith.constant 0 : index
    %4 = vector.load %arg2[%c0_3, %c0_4] : memref<32x128xf32, #tpu.memory_space<vmem>>, vector<32x128xf32>
    %5 = arith.truncf %4 : vector<32x128xf32> to vector<32x128xbf16>
    %c128 = arith.constant 128 : index
    %c0_5 = arith.constant 0 : index
    %6 = vector.load %arg4[%c128, %c0_5] : memref<384x640xbf16, #tpu.memory_space<vmem>>, vector<128x640xbf16>
    %cst_6 = arith.constant dense<0.000000e+00> : vector<32x640xf32>
    %7 = tpu.matmul %5, %6, %cst_6 {dimension_numbers = #tpu.dot_dimension_numbers<[1], [0], [0], [1], [0, 0, 1, 1], [], []>} : vector<32x128xbf16>, vector<128x640xbf16>, vector<32x640xf32> -> vector<32x640xf32>
    %8 = arith.addf %3, %7 : vector<32x640xf32>
    %c0_7 = arith.constant 0 : index
    %c0_8 = arith.constant 0 : index
    %9 = vector.load %arg3[%c0_7, %c0_8] : memref<32x128xf32, #tpu.memory_space<vmem>>, vector<32x128xf32>
    %10 = arith.truncf %9 : vector<32x128xf32> to vector<32x128xbf16>
    %c256 = arith.constant 256 : index
    %c0_9 = arith.constant 0 : index
    %11 = vector.load %arg4[%c256, %c0_9] : memref<384x640xbf16, #tpu.memory_space<vmem>>, vector<128x640xbf16>
    %cst_10 = arith.constant dense<0.000000e+00> : vector<32x640xf32>
    %12 = tpu.matmul %10, %11, %cst_10 {dimension_numbers = #tpu.dot_dimension_numbers<[1], [0], [0], [1], [0, 0, 1, 1], [], []>} : vector<32x128xbf16>, vector<128x640xbf16>, vector<32x640xf32> -> vector<32x640xf32>
    %13 = arith.addf %8, %12 : vector<32x640xf32>
    %c0_11 = arith.constant 0 : index
    %c0_12 = arith.constant 0 : index
    %14 = vector.load %arg5[%c0_11, %c0_12] : memref<1x640xf32, #tpu.memory_space<vmem>>, vector<1x640xf32>
    %15 = vector.broadcast %14 : vector<1x640xf32> to vector<32x640xf32>
    %16 = arith.addf %13, %15 : vector<32x640xf32>
    %17 = vector.extract_strided_slice %16 {offsets = [0, 0], sizes = [32, 128], strides = [1, 1]} : vector<32x640xf32> to vector<32x128xf32>
    %18 = vector.extract_strided_slice %16 {offsets = [0, 128], sizes = [32, 128], strides = [1, 1]} : vector<32x640xf32> to vector<32x128xf32>
    %19 = vector.extract_strided_slice %16 {offsets = [0, 256], sizes = [32, 128], strides = [1, 1]} : vector<32x640xf32> to vector<32x128xf32>
    %20 = math.tanh %17 : vector<32x128xf32>
    %cst_13 = arith.constant 5.000000e-01 : f32
    %21 = vector.broadcast %cst_13 : f32 to vector<32x128xf32>
    %22 = arith.mulf %21, %18 : vector<32x128xf32>
    %23 = math.tanh %22 : vector<32x128xf32>
    %cst_14 = arith.constant 5.000000e-01 : f32
    %24 = vector.broadcast %cst_14 : f32 to vector<32x128xf32>
    %25 = arith.mulf %24, %23 : vector<32x128xf32>
    %cst_15 = arith.constant 5.000000e-01 : f32
    %26 = vector.broadcast %cst_15 : f32 to vector<32x128xf32>
    %27 = arith.addf %25, %26 : vector<32x128xf32>
    %28 = arith.mulf %20, %27 : vector<32x128xf32>
    %29 = vector.extract_strided_slice %16 {offsets = [0, 384], sizes = [32, 128], strides = [1, 1]} : vector<32x640xf32> to vector<32x128xf32>
    %c0_16 = arith.constant 0 : index
    %c0_17 = arith.constant 0 : index
    %30 = vector.load %arg6[%c0_16, %c0_17] : memref<32x128xf32, #tpu.memory_space<vmem>>, vector<32x128xf32>
    %cst_18 = arith.constant 5.000000e-01 : f32
    %31 = vector.broadcast %cst_18 : f32 to vector<32x128xf32>
    %32 = arith.mulf %31, %29 : vector<32x128xf32>
    %33 = math.tanh %32 : vector<32x128xf32>
    %cst_19 = arith.constant 5.000000e-01 : f32
    %34 = vector.broadcast %cst_19 : f32 to vector<32x128xf32>
    %35 = arith.mulf %34, %33 : vector<32x128xf32>
    %cst_20 = arith.constant 5.000000e-01 : f32
    %36 = vector.broadcast %cst_20 : f32 to vector<32x128xf32>
    %37 = arith.addf %35, %36 : vector<32x128xf32>
    %38 = arith.mulf %37, %30 : vector<32x128xf32>
    %39 = arith.addf %28, %38 : vector<32x128xf32>
    %40 = vector.extract_strided_slice %16 {offsets = [0, 512], sizes = [32, 128], strides = [1, 1]} : vector<32x640xf32> to vector<32x128xf32>
    %c0_21 = arith.constant 0 : index
    %c0_22 = arith.constant 0 : index
    %41 = vector.load %arg7[%c0_21, %c0_22] : memref<32x128xf32, #tpu.memory_space<vmem>>, vector<32x128xf32>
    %cst_23 = arith.constant 5.000000e-01 : f32
    %42 = vector.broadcast %cst_23 : f32 to vector<32x128xf32>
    %43 = arith.mulf %42, %40 : vector<32x128xf32>
    %44 = math.tanh %43 : vector<32x128xf32>
    %cst_24 = arith.constant 5.000000e-01 : f32
    %45 = vector.broadcast %cst_24 : f32 to vector<32x128xf32>
    %46 = arith.mulf %45, %44 : vector<32x128xf32>
    %cst_25 = arith.constant 5.000000e-01 : f32
    %47 = vector.broadcast %cst_25 : f32 to vector<32x128xf32>
    %48 = arith.addf %46, %47 : vector<32x128xf32>
    %49 = arith.mulf %48, %41 : vector<32x128xf32>
    %50 = arith.addf %39, %49 : vector<32x128xf32>
    %cst_26 = arith.constant 5.000000e-01 : f32
    %51 = vector.broadcast %cst_26 : f32 to vector<32x128xf32>
    %52 = arith.mulf %51, %19 : vector<32x128xf32>
    %53 = math.tanh %52 : vector<32x128xf32>
    %cst_27 = arith.constant 5.000000e-01 : f32
    %54 = vector.broadcast %cst_27 : f32 to vector<32x128xf32>
    %55 = arith.mulf %54, %53 : vector<32x128xf32>
    %cst_28 = arith.constant 5.000000e-01 : f32
    %56 = vector.broadcast %cst_28 : f32 to vector<32x128xf32>
    %57 = arith.addf %55, %56 : vector<32x128xf32>
    %58 = math.tanh %50 : vector<32x128xf32>
    %59 = arith.mulf %57, %58 : vector<32x128xf32>
    %c0_29 = arith.constant 0 : index
    %c0_30 = arith.constant 0 : index
    %60 = vector.load %arg8[%c0_29, %c0_30] : memref<32x128xf32, #tpu.memory_space<vmem>>, vector<32x128xf32>
    tpu.vector_store %arg8[%c0_29, %c0_30], %59 {strides = array<i32>} : memref<32x128xf32, #tpu.memory_space<vmem>>, vector<32x128xf32>,
    %c0_31 = arith.constant 0 : index
    %c0_32 = arith.constant 0 : index
    %61 = vector.load %arg9[%c0_31, %c0_32] : memref<32x128xf32, #tpu.memory_space<vmem>>, vector<32x128xf32>
    tpu.vector_store %arg9[%c0_31, %c0_32], %50 {strides = array<i32>} : memref<32x128xf32, #tpu.memory_space<vmem>>, vector<32x128xf32>,
    return
  }
  func.func @transform_0(%arg0: i32) -> (i32, i32) {
    %c0_i32 = arith.constant 0 : i32
    %c0_i32_0 = arith.constant 0 : i32
    return %arg0, %c0_i32 : i32, i32
  }
  func.func @transform_1(%arg0: i32) -> (i32, i32) {
    %c0_i32 = arith.constant 0 : i32
    %c0_i32_0 = arith.constant 0 : i32
    return %arg0, %c0_i32 : i32, i32
  }
  func.func @transform_2(%arg0: i32) -> (i32, i32) {
    %c0_i32 = arith.constant 0 : i32
    %c0_i32_0 = arith.constant 0 : i32
    return %arg0, %c0_i32 : i32, i32
  }
  func.func @transform_3(%arg0: i32) -> (i32, i32) {
    %c0_i32 = arith.constant 0 : i32
    %c0_i32_0 = arith.constant 0 : i32
    %c0_i32_1 = arith.constant 0 : i32
    return %c0_i32, %c0_i32_0 : i32, i32
  }
  func.func @transform_4(%arg0: i32) -> (i32, i32) {
    %c0_i32 = arith.constant 0 : i32
    %c0_i32_0 = arith.constant 0 : i32
    %c0_i32_1 = arith.constant 0 : i32
    return %c0_i32, %c0_i32_0 : i32, i32
  }
  func.func @transform_5(%arg0: i32) -> (i32, i32) {
    %c0_i32 = arith.constant 0 : i32
    %c0_i32_0 = arith.constant 0 : i32
    return %arg0, %c0_i32 : i32, i32
  }
  func.func @transform_6(%arg0: i32) -> (i32, i32) {
    %c0_i32 = arith.constant 0 : i32
    %c0_i32_0 = arith.constant 0 : i32
    return %arg0, %c0_i32 : i32, i32
  }
  func.func @transform_7(%arg0: i32) -> (i32, i32) {
    %c0_i32 = arith.constant 0 : i32
    %c0_i32_0 = arith.constant 0 : i32
    return %arg0, %c0_i32 : i32, i32
  }
  func.func @transform_8(%arg0: i32) -> (i32, i32) {
    %c0_i32 = arith.constant 0 : i32
    %c0_i32_0 = arith.constant 0 : i32
    return %arg0, %c0_i32 : i32, i32
  }
}

</mosaic_0001>

<bundles_post_ra>
// kernel: tpu_custom_call.1
= control target key start
LH: loop header
LB: loop body
LE: loop exit
PB: predicated region body
PF: predicated region fallthrough
CT: control target
= control target key end

     0   :  { %14 = vsyncpa [#allocation3], 0  ;;  %s2546_s0 = inlined_call_operand.hbm [shape: f32[32,128], index: 0, kind: input, shape index: {}]   ;;  %s2547_s1 = inlined_call_operand.hbm [shape: f32[32,128], index: 1, kind: input, shape index: {}]   ;;  %s2548_s2 = inlined_call_operand.hbm [shape: f32[32,128], index: 2, kind: input, shape index: {}]   ;;  %s2549_s3 = inlined_call_operand.hbm [shape: bf16[384,640], index: 3, kind: input, shape index: {}]   ;;  %s2550_s4 = inlined_call_operand.hbm [shape: f32[1,640], index: 4, kind: input, shape index: {}]   ;;  %s2551_s5 = inlined_call_operand.hbm [shape: f32[32,128], index: 5, kind: input, shape index: {}]   ;;  %s2552_s6 = inlined_call_operand.hbm [shape: f32[32,128], index: 6, kind: input, shape index: {}]   ;;  %s2553_s7 = inlined_call_operand.hbm [shape: f32[32,128], index: 7, kind: output, shape index: {0}]   ;;  %s2554_s8 = inlined_call_operand.hbm [shape: f32[32,128], index: 8, kind: output, shape index: {1}]  }
   0x1   :  { %15 = vsyncpa [#allocation6], 0 }
   0x2   :  { %16 = vsyncpa [#allocation9], 0 }
   0x3   :  { %17 = vsyncpa [#allocation12], 0 }
   0x4   :  { %18 = vsyncpa [#allocation4], 0 }
   0x5   :  { %19 = vsyncpa [#allocation16], 0  ;;  %s2280_s27 = smov [#allocation5]   ;;  %s2281_s29 = smov [#allocation8]  }
   0x6   :  { %s37_s28 = sshll.u32 %s2280_s27, 4  ;;  %s61_s30 = sshll.u32 %s2281_s29, 4  ;;  %s38_s28 = int_to_ptr.vmem [resolvable:$true] %s37_s28  ;;  %s2339_s30 = int_to_ptr.vmem [resolvable:$true] %s61_s30 }
   0x7   :  { %s2070_s11 = scalar_lea.hbm %s2547_s1, 512 }
   0x8   :  { %p2071_p0 = scmp.ne.s32.totalorder %s2547_s1, %s2070_s11  ;;  %p2074_p1 = scmp.lt.u32.totalorder %s2070_s11, %s2547_s1 }
   0xa   :  { %p2076_p2 = pnand %p2074_p1, %p2071_p0 }
   0xc   :  { %2079 = shalt.err (!%p2076_p2)
}
   0xd   :  { %s2080_s16 = scalar_lea.vmem %s38_s28, 512  ;;  %p2085_p4 = scmp.lt.s32.totalorder %s38_s28, %s38_s28 }
   0xe   :  { %p2081_p3 = scmp.ne.s32.totalorder %s38_s28, %s2080_s16  ;;  %p2086_p5 = scmp.lt.s32.totalorder %s2080_s16, %s2080_s16 }
  0x10   :  { %p2087_p6 = por %p2086_p5, %p2085_p4 }
  0x12   :  { %p2088_p7 = pnand %p2087_p6, %p2081_p3 }
  0x14   :  { %2091 = shalt.err (!%p2088_p7)
}
  0x15   :  { %s2282_s17 = smov 128   ;;  %s2283_s18 = smov 8  }
  0x16   :  { %43 = dma.hbm_to_vmem [thread:$0]  %s2547_s1, 512, %s38_s28, [#allocation6], %s2282_s17, %s2282_s17, %s2283_s18  }
  0x17   :  { %s2092_s23 = scalar_lea.hbm %s2549_s3, 15360 }
  0x18   :  { %p2093_p8 = scmp.ne.s32.totalorder %s2549_s3, %s2092_s23  ;;  %p2096_p9 = scmp.lt.u32.totalorder %s2092_s23, %s2549_s3 }
  0x1a   :  { %p2098_p10 = pnand %p2096_p9, %p2093_p8 }
  0x1c   :  { %2101 = shalt.err (!%p2098_p10)
}
  0x1d   :  { %s2102_s29 = scalar_lea.vmem %s2339_s30, 15360  ;;  %p2107_p12 = scmp.lt.s32.totalorder %s2339_s30, %s2339_s30 }
  0x1e   :  { %p2103_p11 = scmp.ne.s32.totalorder %s2339_s30, %s2102_s29  ;;  %p2108_p13 = scmp.lt.s32.totalorder %s2102_s29, %s2102_s29 }
  0x20   :  { %p2109_p0 = por %p2108_p13, %p2107_p12 }
  0x22   :  { %p2110_p1 = pnand %p2109_p0, %p2103_p11 }
  0x24   :  { %2113 = shalt.err (!%p2110_p1)
}
  0x25   :  { %s2284_s1 = smov 320   ;;  %s2285_s28 = smov 20  }
  0x26   :  { %67 = dma.hbm_to_vmem [thread:$0]  %s2549_s3, 15360, %s2339_s30, [#allocation9], %s2284_s1, %s2284_s1, %s2285_s28  }
  0x27   :  { %s2286_s11 = smov [#allocation11]   ;;  %s2287_s13 = smov [#allocation2]  }
  0x28   :  { %s83_s12 = sshll.u32 %s2286_s11, 4  ;;  %s25_s14 = sshll.u32 %s2287_s13, 4  ;;  %s84_s12 = int_to_ptr.vmem [resolvable:$true] %s83_s12  ;;  %s2373_s14 = int_to_ptr.vmem [resolvable:$true] %s25_s14 }
  0x29   :  { %s2114_s19 = scalar_lea.hbm %s2551_s5, 512 }
  0x2a   :  { %p2115_p2 = scmp.ne.s32.totalorder %s2551_s5, %s2114_s19  ;;  %p2118_p3 = scmp.lt.u32.totalorder %s2114_s19, %s2551_s5 }
  0x2c   :  { %p2120_p4 = pnand %p2118_p3, %p2115_p2 }
  0x2e   :  { %2123 = shalt.err (!%p2120_p4)
}
  0x2f   :  { %s2124_s3 = scalar_lea.vmem %s84_s12, 512  ;;  %p2129_p6 = scmp.lt.s32.totalorder %s84_s12, %s84_s12 }
  0x30   :  { %p2125_p5 = scmp.ne.s32.totalorder %s84_s12, %s2124_s3  ;;  %p2130_p7 = scmp.lt.s32.totalorder %s2124_s3, %s2124_s3 }
  0x32   :  { %p2131_p8 = por %p2130_p7, %p2129_p6 }
  0x34   :  { %p2132_p9 = pnand %p2131_p8, %p2125_p5 }
  0x36   :  { %2135 = shalt.err (!%p2132_p9)
}
  0x37   :  { %89 = dma.hbm_to_vmem [thread:$0]  %s2551_s5, 512, %s84_s12, [#allocation12], %s2282_s17, %s2282_s17, %s2283_s18  }
  0x38   :  { %s2136_s27 = scalar_lea.hbm %s2546_s0, 512 }
  0x39   :  { %p2137_p10 = scmp.ne.s32.totalorder %s2546_s0, %s2136_s27  ;;  %p2140_p11 = scmp.lt.u32.totalorder %s2136_s27, %s2546_s0 }
  0x3b   :  { %p2142_p12 = pnand %p2140_p11, %p2137_p10 }
  0x3d   :  { %2145 = shalt.err (!%p2142_p12)
}
  0x3e   :  { %s2146_s10 = scalar_lea.vmem %s2373_s14, 512  ;;  %p2151_p0 = scmp.lt.s32.totalorder %s2373_s14, %s2373_s14 }
  0x3f   :  { %p2147_p13 = scmp.ne.s32.totalorder %s2373_s14, %s2146_s10  ;;  %p2152_p1 = scmp.lt.s32.totalorder %s2146_s10, %s2146_s10 }
  0x41   :  { %p2153_p2 = por %p2152_p1, %p2151_p0 }
  0x43   :  { %p2154_p3 = pnand %p2153_p2, %p2147_p13 }
  0x45   :  { %2157 = shalt.err (!%p2154_p3)
}
  0x46   :  { %31 = dma.hbm_to_vmem [thread:$0]  %s2546_s0, 512, %s2373_s14, [#allocation3], %s2282_s17, %s2282_s17, %s2283_s18  }
  0x47   :  { %s2288_s12 = smov [#allocation7]   ;;  %s2289_s15 = smov [#allocation10]  }
  0x48   :  { %s49_s13 = sshll.u32 %s2288_s12, 4  ;;  %s74_s16 = sshll.u32 %s2289_s15, 4  ;;  %s50_s13 = int_to_ptr.vmem [resolvable:$true] %s49_s13  ;;  %s75_s16 = int_to_ptr.vmem [resolvable:$true] %s74_s16 }
  0x49   :  { %s2158_s21 = scalar_lea.hbm %s2548_s2, 512 }
  0x4a   :  { %p2159_p4 = scmp.ne.s32.totalorder %s2548_s2, %s2158_s21  ;;  %p2162_p5 = scmp.lt.u32.totalorder %s2158_s21, %s2548_s2 }
  0x4c   :  { %p2164_p6 = pnand %p2162_p5, %p2159_p4 }
  0x4e   :  { %2167 = shalt.err (!%p2164_p6)
}
  0x4f   :  { %s2168_s0 = scalar_lea.vmem %s50_s13, 512  ;;  %p2173_p8 = scmp.lt.s32.totalorder %s50_s13, %s50_s13 }
  0x50   :  { %p2169_p7 = scmp.ne.s32.totalorder %s50_s13, %s2168_s0  ;;  %p2174_p9 = scmp.lt.s32.totalorder %s2168_s0, %s2168_s0 }
  0x52   :  { %p2175_p10 = por %p2174_p9, %p2173_p8 }
  0x54   :  { %p2176_p11 = pnand %p2175_p10, %p2169_p7 }
  0x56   :  { %2179 = shalt.err (!%p2176_p11)
}
  0x57   :  { %55 = dma.hbm_to_vmem [thread:$0]  %s2548_s2, 512, %s50_s13, [#allocation6], %s2282_s17, %s2282_s17, %s2283_s18  }
  0x58   :  { %s2180_s27 = scalar_lea.hbm %s2550_s4, 80 }
  0x59   :  { %p2181_p12 = scmp.ne.s32.totalorder %s2550_s4, %s2180_s27  ;;  %p2184_p13 = scmp.lt.u32.totalorder %s2180_s27, %s2550_s4 }
  0x5b   :  { %p2186_p0 = pnand %p2184_p13, %p2181_p12 }
  0x5d   :  { %2189 = shalt.err (!%p2186_p0)
}
  0x5e   :  { %s2190_s10 = scalar_lea.vmem %s75_s16, 80  ;;  %s2194_s5 = scalar_lea.vmem %s75_s16, 96 }
  0x5f   :  { %p2191_p1 = scmp.ne.s32.totalorder %s75_s16, %s2190_s10  ;;  %p2195_p2 = scmp.lt.s32.totalorder %s75_s16, %s75_s16 }
  0x60   :  { %p2196_p3 = scmp.lt.s32.totalorder %s2194_s5, %s2190_s10 }
  0x62   :  { %p2197_p4 = por %p2196_p3, %p2195_p2 }
  0x64   :  { %p2198_p5 = pnand %p2197_p4, %p2191_p1 }
  0x66   :  { %2201 = shalt.err (!%p2198_p5)
}
  0x67   :  { %77 = dma.hbm_to_vmem [thread:$0]  %s2550_s4, 80, %s75_s16, [#allocation9]  }
  0x68   :  { %s2290_s12 = smov [#allocation13]   ;;  %s2202_s20 = scalar_lea.hbm %s2552_s6, 512 }
  0x69   :  { %s95_s13 = sshll.u32 %s2290_s12, 4  ;;  %p2203_p6 = scmp.ne.s32.totalorder %s2552_s6, %s2202_s20  ;;  %s96_s13 = int_to_ptr.vmem [resolvable:$true] %s95_s13 }
  0x6a   :  { %p2206_p7 = scmp.lt.u32.totalorder %s2202_s20, %s2552_s6 }
  0x6c   :  { %p2208_p8 = pnand %p2206_p7, %p2203_p6 }
  0x6e   :  { %2211 = shalt.err (!%p2208_p8)
}
  0x6f   :  { %s2212_s30 = scalar_lea.vmem %s96_s13, 512  ;;  %p2217_p10 = scmp.lt.s32.totalorder %s96_s13, %s96_s13 }
  0x70   :  { %p2213_p9 = scmp.ne.s32.totalorder %s96_s13, %s2212_s30  ;;  %p2218_p11 = scmp.lt.s32.totalorder %s2212_s30, %s2212_s30 }
  0x72   :  { %p2219_p12 = por %p2218_p11, %p2217_p10 }
  0x74   :  { %p2220_p13 = pnand %p2219_p12, %p2213_p9 }
  0x76   :  { %2223 = shalt.err (!%p2220_p13)
}
  0x77   :  { %101 = dma.hbm_to_vmem [thread:$0]  %s2552_s6, 512, %s96_s13, [#allocation12], %s2282_s17, %s2282_s17, %s2283_s18  }
  0x78   :  { %2268 = dma.done.wait [#allocation3], 512  }
  0x79   :  { %2269 = vsyncadd [#allocation3], 4294966784 }
  0x7a   :  { %2270 = dma.done.wait [#allocation6], 1024  }
  0x7b   :  { %2271 = vsyncadd [#allocation6], 4294966272 }
  0x7c   :  { %2272 = dma.done.wait [#allocation9], 15440  }
  0x7d   :  { %2273 = vsyncadd [#allocation9], 4294951856 }
  0x7e   :  { %2274 = dma.done.wait [#allocation12], 1024  }
  0x7f   :  { %2275 = vsyncadd [#allocation12], 4294966272  ;;  %v2291_v0 = vmov 0   ;;  %v1854_v1 = vld [vmem:[#allocation8 + $0x144] ss:$20 sps:$4 sm:$0xff]   ;;  %v179_v20 = vld [vmem:[#allocation5 + $0x8] sm:$0xff] }
  0x80   :  { %472 = vmatprep.mubr.bf16.mxu1 %v2291_v0  ;;  %v1856_v2 = vld [vmem:[#allocation8 + $0x150] ss:$20 sps:$4 sm:$0xff]   ;;  %440 = vmatprep.subr.bf16.mxu1 %v1854_v1  ;;  %v1857_v3 = vld [vmem:[#allocation8 + $0x140] ss:$20 sps:$4 sm:$0xff]   ;;  %v1860_v5 = vld [vmem:[#allocation8 + $0x178] ss:$20 sps:$4 sm:$0xff]  }
  0x81   :  { %1740 = vmatprep.subr.bf16.mxu0 %v1856_v2  ;;  %v1858_v4 = vld [vmem:[#allocation8 + $0x16c] ss:$20 sps:$4 sm:$0xff]   ;;  %441 = vmatpush1.bf16.msra.mxu1 %v1857_v3  ;;  %v1861_v6 = vld [vmem:[#allocation8 + $0x168] ss:$20 sps:$4 sm:$0xff]   ;;  %v1865_v9 = vld [vmem:[#allocation8 + $0x190] ss:$20 sps:$4 sm:$0xff]  }
  0x82   :  { %1741 = vmatpush3.bf16.msra.mxu0 %v1856_v2  ;;  %442 = vmatprep.subr.bf16.mxu1 %v1858_v4  ;;  %v1862_v7 = vld [vmem:[#allocation8 + $0x194] ss:$20 sps:$4 sm:$0xff]   ;;  %v1866_v10 = vld [vmem:[#allocation8 + $0x1bc] ss:$20 sps:$4 sm:$0xff]   ;;  %v1869_v12 = vld [vmem:[#allocation8 + $0x1b8] ss:$20 sps:$4 sm:$0xff]  }
  0x83   :  { %1742 = vmatprep.subr.bf16.mxu0 %v1860_v5  ;;  %v1864_v8 = vld [vmem:[#allocation8 + $0x1a0] ss:$20 sps:$4 sm:$0xff]   ;;  %v1868_v11 = vld [vmem:[#allocation8 + $0x1c8] ss:$20 sps:$4 sm:$0xff]   ;;  %v1870_v13 = vld [vmem:[#allocation8 + $0x1e4] ss:$20 sps:$4 sm:$0xff]  }
  0x84   :  { %v1872_v14 = vld [vmem:[#allocation8 + $0x1f0] ss:$20 sps:$4 sm:$0xff]   ;;  %v1873_v15 = vld [vmem:[#allocation8 + $0x1e0] ss:$20 sps:$4 sm:$0xff]   ;;  %v1876_v17 = vld [vmem:[#allocation8 + $0x218] ss:$20 sps:$4 sm:$0xff]  }
  0x85   :  { %443 = vmatpush1.bf16.msra.mxu1 %v1861_v6  ;;  %v1874_v16 = vld [vmem:[#allocation8 + $0x20c] ss:$20 sps:$4 sm:$0xff]   ;;  %v1877_v18 = vld [vmem:[#allocation8 + $0x208] ss:$20 sps:$4 sm:$0xff]   ;;  %v1881_v24 = vld [vmem:[#allocation8 + $0x230] ss:$20 sps:$4 sm:$0xff]  }
  0x86   :  { %1743 = vmatpush3.bf16.msra.mxu0 %v1860_v5  ;;  %444 = vmatprep.subr.bf16.mxu1 %v1862_v7  ;;  %v178_v19 = vld [vmem:[#allocation5] sm:$0xff]  ;;  %v1878_v21 = vld [vmem:[#allocation8 + $0x234] ss:$20 sps:$4 sm:$0xff]   ;;  %v1882_v25 = vld [vmem:[#allocation8 + $0x25c] ss:$20 sps:$4 sm:$0xff]   ;;  %s2292_s6 = smov [#allocation15]  }
  0x87   :  { %1744 = vmatprep.subr.bf16.mxu0 %v1864_v8  ;;  %v1880_v22 = vld [vmem:[#allocation8 + $0x240] ss:$20 sps:$4 sm:$0xff]   ;;  %v2453_v23 = vpack.c.bf16 %v179_v20, %v178_v19  ;;  %v1884_v26 = vld [vmem:[#allocation8 + $0x268] ss:$20 sps:$4 sm:$0xff]   ;;  %v1885_v27 = vld [vmem:[#allocation8 + $0x258] ss:$20 sps:$4 sm:$0xff]  }
  0x88   :  { %v1888_v28 = vld [vmem:[#allocation8 + $0x14c] ss:$20 sps:$4 sm:$0xff]   ;;  %v180_v29 = vld [vmem:[#allocation5 + $0x10] sm:$0xff]  ;;  %v181_v30 = vld [vmem:[#allocation5 + $0x18] sm:$0xff]  ;;  %s1571_s0 = sshll.u32 %s2292_s6, 4  ;;  %s1572_s0 = int_to_ptr.vmem [resolvable:$true] %s1571_s0 }
  0x89   :  { %445 = vmatpush1.bf16.msra.mxu1 %v1865_v9  ;;  %1756 = vmatprep.mubr.bf16.mxu0 %v2453_v23  ;;  %v1891_v31 = vld [vmem:[#allocation8 + $0x4] ss:$20 sps:$4 sm:$0xff]   ;;  %v1886_v32 = vld [vmem:[#allocation8 + $0x148] ss:$20 sps:$4 sm:$0xff]   ;;  %v1889_v33 = vld [vmem:[#allocation8] ss:$20 sps:$4 sm:$0xff]   ;;  %v2456_v34 = vpack.c.bf16 %v181_v30, %v180_v29  ;;  %p2229_p1 = scmp.lt.s32.totalorder %s1572_s0, %s1572_s0 }
  0x8a   :  { %1745 = vmatpush3.bf16.msra.mxu0 %v1864_v8  ;;  %446 = vmatprep.subr.bf16.mxu1 %v1866_v10  ;;  %v1894_v35 = vld [vmem:[#allocation8 + $0x174] ss:$20 sps:$4 sm:$0xff]   ;;  %v1897_v36 = vld [vmem:[#allocation8 + $0x2c] ss:$20 sps:$4 sm:$0xff]   ;;  %v1892_v37 = vld [vmem:[#allocation8 + $0x170] ss:$20 sps:$4 sm:$0xff]  }
  0x8b   :  { %1746 = vmatprep.subr.bf16.mxu0 %v1868_v11  ;;  %v1895_v38 = vld [vmem:[#allocation8 + $0x28] ss:$20 sps:$4 sm:$0xff]   ;;  %v1898_v41 = vld [vmem:[#allocation8 + $0x198] ss:$20 sps:$4 sm:$0xff]   ;;  %v1901_v42 = vld [vmem:[#allocation8 + $0x50] ss:$20 sps:$4 sm:$0xff]  }
  0x8c   :  { %v1900_v39 = vld [vmem:[#allocation8 + $0x19c] ss:$20 sps:$4 sm:$0xff]   ;;  %v1903_v40 = vld [vmem:[#allocation8 + $0x54] ss:$20 sps:$4 sm:$0xff]   ;;  %v1906_v43 = vld [vmem:[#allocation8 + $0x1c4] ss:$20 sps:$4 sm:$0xff]  }
  0x8d   :  { %447 = vmatpush1.bf16.msra.mxu1 %v1869_v12  ;;  %v1909_v44 = vld [vmem:[#allocation8 + $0x7c] ss:$20 sps:$4 sm:$0xff]   ;;  %v1904_v45 = vld [vmem:[#allocation8 + $0x1c0] ss:$20 sps:$4 sm:$0xff]   ;;  %v1907_v46 = vld [vmem:[#allocation8 + $0x78] ss:$20 sps:$4 sm:$0xff]  }
  0x8e   :  { %1747 = vmatpush3.bf16.msra.mxu0 %v1868_v11  ;;  %448 = vmatprep.subr.bf16.mxu1 %v1870_v13  ;;  %v1912_v47 = vld [vmem:[#allocation8 + $0x1ec] ss:$20 sps:$4 sm:$0xff]   ;;  %v1915_v48 = vld [vmem:[#allocation8 + $0xa4] ss:$20 sps:$4 sm:$0xff]   ;;  %v1910_v49 = vld [vmem:[#allocation8 + $0x1e8] ss:$20 sps:$4 sm:$0xff]  }
  0x8f   :  { %1748 = vmatprep.subr.bf16.mxu0 %v1872_v14  ;;  %v1913_v50 = vld [vmem:[#allocation8 + $0xa0] ss:$20 sps:$4 sm:$0xff]   ;;  %v1916_v53 = vld [vmem:[#allocation8 + $0x210] ss:$20 sps:$4 sm:$0xff]   ;;  %v1919_v54 = vld [vmem:[#allocation8 + $0xc8] ss:$20 sps:$4 sm:$0xff]  }
  0x90   :  { %v1918_v51 = vld [vmem:[#allocation8 + $0x214] ss:$20 sps:$4 sm:$0xff]   ;;  %v1921_v52 = vld [vmem:[#allocation8 + $0xcc] ss:$20 sps:$4 sm:$0xff]   ;;  %v1924_v55 = vld [vmem:[#allocation8 + $0x23c] ss:$20 sps:$4 sm:$0xff]  }
  0x91   :  { %449 = vmatpush1.bf16.msra.mxu1 %v1873_v15  ;;  %v1927_v56 = vld [vmem:[#allocation8 + $0xf4] ss:$20 sps:$4 sm:$0xff]   ;;  %v1922_v57 = vld [vmem:[#allocation8 + $0x238] ss:$20 sps:$4 sm:$0xff]   ;;  %v1925_v58 = vld [vmem:[#allocation8 + $0xf0] ss:$20 sps:$4 sm:$0xff]  }
  0x92   :  { %1749 = vmatpush3.bf16.msra.mxu0 %v1872_v14  ;;  %450 = vmatprep.subr.bf16.mxu1 %v1874_v16  ;;  %v1930_v59 = vld [vmem:[#allocation8 + $0x264] ss:$20 sps:$4 sm:$0xff]   ;;  %v1933_v60 = vld [vmem:[#allocation8 + $0x11c] ss:$20 sps:$4 sm:$0xff]   ;;  %v1928_v61 = vld [vmem:[#allocation8 + $0x260] ss:$20 sps:$4 sm:$0xff]  }
  0x93   :  { %1750 = vmatprep.subr.bf16.mxu0 %v1876_v17  ;;  %v1931_v62 = vld [vmem:[#allocation8 + $0x118] ss:$20 sps:$4 sm:$0xff]   ;;  %v124_v1 = vld [vmem:[#allocation2] sm:$0xff]  ;;  %v1934_v4 = vld [vmem:[#allocation8 + $0x8] ss:$20 sps:$4 sm:$0xff]   ;;  %s2224_s14 = scalar_lea.vmem %s1572_s0, 512 }
  0x94   :  { %v1936_v63 = vld [vmem:[#allocation8 + $0xc] ss:$20 sps:$4 sm:$0xff]   ;;  %v1937_v3 = vld [vmem:[#allocation8 + $0x10] ss:$20 sps:$4 sm:$0xff]   ;;  %v1940_v6 = vld [vmem:[#allocation8 + $0x34] ss:$20 sps:$4 sm:$0xff]   ;;  %p2225_p0 = scmp.ne.s32.totalorder %s1572_s0, %s2224_s14  ;;  %p2230_p2 = scmp.lt.s32.totalorder %s2224_s14, %s2224_s14 }
  0x95   :  { %451 = vmatpush1.bf16.msra.mxu1 %v1877_v18  ;;  %v125_v2 = vld [vmem:[#allocation2 + $0x8] sm:$0xff]  ;;  %v1938_v8 = vld [vmem:[#allocation8 + $0x30] ss:$20 sps:$4 sm:$0xff]   ;;  %v127_v11 = vld [vmem:[#allocation2 + $0x18] sm:$0xff] }
  0x96   :  { %1751 = vmatpush3.bf16.msra.mxu0 %v1876_v17  ;;  %452 = vmatprep.subr.bf16.mxu1 %v1878_v21  ;;  %v2464_v5 = vpack.c.bf16 %v125_v2, %v124_v1  ;;  %v1941_v7 = vld [vmem:[#allocation8 + $0x38] ss:$20 sps:$4 sm:$0xff]   ;;  %v1944_v9 = vld [vmem:[#allocation8 + $0x5c] ss:$20 sps:$4 sm:$0xff]   ;;  %v1945_v12 = vld [vmem:[#allocation8 + $0x60] ss:$20 sps:$4 sm:$0xff]   ;;  %p2231_p3 = por %p2230_p2, %p2229_p1 }
  0x97   :  { %1752 = vmatprep.subr.bf16.mxu0 %v1880_v22  ;;  %v126_v10 = vld [vmem:[#allocation2 + $0x10] sm:$0xff]  ;;  %v1942_v13 = vld [vmem:[#allocation8 + $0x58] ss:$20 sps:$4 sm:$0xff]   ;;  %v1949_v16 = vld [vmem:[#allocation8 + $0x88] ss:$20 sps:$4 sm:$0xff]  }
  0x98   :  { %v2470_v14 = vpack.c.bf16 %v127_v11, %v126_v10  ;;  %v1948_v15 = vld [vmem:[#allocation8 + $0x84] ss:$20 sps:$4 sm:$0xff]   ;;  %v1946_v17 = vld [vmem:[#allocation8 + $0x80] ss:$20 sps:$4 sm:$0xff]   ;;  %v1950_v20 = vld [vmem:[#allocation8 + $0xa8] ss:$20 sps:$4 sm:$0xff]   ;;  %p2232_p4 = pnand %p2231_p3, %p2225_p0 }
  0x99   :  { %453 = vmatpush1.bf16.msra.mxu1 %v1881_v24  ;;  %v1952_v18 = vld [vmem:[#allocation8 + $0xac] ss:$20 sps:$4 sm:$0xff]   ;;  %v1953_v19 = vld [vmem:[#allocation8 + $0xb0] ss:$20 sps:$4 sm:$0xff]   ;;  %v1956_v21 = vld [vmem:[#allocation8 + $0xd4] ss:$20 sps:$4 sm:$0xff]  }
  0x9a   :  { %1753 = vmatpush3.bf16.msra.mxu0 %v1880_v22  ;;  %454 = vmatprep.subr.bf16.mxu1 %v1882_v25  ;;  %v1957_v22 = vld [vmem:[#allocation8 + $0xd8] ss:$20 sps:$4 sm:$0xff]   ;;  %v1960_v24 = vld [vmem:[#allocation8 + $0xfc] ss:$20 sps:$4 sm:$0xff]   ;;  %v1961_v25 = vld [vmem:[#allocation8 + $0x100] ss:$20 sps:$4 sm:$0xff]  }
  0x9b   :  { %1754 = vmatprep.subr.bf16.mxu0 %v1884_v26  ;;  %v1962_v29 = vld [vmem:[#allocation8 + $0x120] ss:$20 sps:$4 sm:$0xff]   ;;  %v1968_v30 = vld [vmem:[#allocation8 + $0x284] ss:$20 sps:$4 sm:$0xff]  }
  0x9c   :  { %v2014_v1 = vld [vmem:[#allocation8 + $0x290] ss:$20 sps:$4 sm:$0xff]   ;;  %v2019_v10 = vld [vmem:[#allocation8 + $0x358] ss:$20 sps:$4 sm:$0xff]   ;;  %v2020_v11 = vld [vmem:[#allocation8 + $0x380] ss:$20 sps:$4 sm:$0xff]  }
  0x9d   :  { %455 = vmatpush1.bf16.msra.mxu1 %v1885_v27  ;;  %v1964_v27 = vld [vmem:[#allocation8 + $0x124] ss:$20 sps:$4 sm:$0xff]  }
  0x9e   :  { %1755 = vmatpush3.bf16.msra.mxu0 %v1884_v26  ;;  %493 = vmatprep.subr.bf16.mxu1 %v1888_v28  ;;  %v1958_v26 = vld [vmem:[#allocation8 + $0xf8] ss:$20 sps:$4 sm:$0xff]   ;;  %v1965_v28 = vld [vmem:[#allocation8 + $0x128] ss:$20 sps:$4 sm:$0xff]  }
  0x9f   :  { %803 = vmatprep.subr.bf16.mxu0 %v1891_v31  ;;  %v1971_v31 = vld [vmem:[#allocation8 + $0x28c] ss:$20 sps:$4 sm:$0xff]  }
  0xa0   :  { %473 = vmatmul.mubr.bf16.vlgmr.msra.gmra.mrb[0].mxu1 %v2453_v23 }
  0xa1   :  { %1757 = vmatmul.mubr.bf16.vlgmr.msra.gmra.mrb[0].mxu0 %v2456_v34  ;;  %494 = vmatpush1.bf16.msra.mxu1 %v1886_v32  ;;  %v1966_v32 = vld [vmem:[#allocation8 + $0x280] ss:$20 sps:$4 sm:$0xff]  }
  0xa2   :  { %804 = vmatpush1.bf16.msra.mxu0 %v1889_v33  ;;  %495 = vmatprep.subr.bf16.mxu1 %v1894_v35  ;;  %v1969_v33 = vld [vmem:[#allocation8 + $0x288] ss:$20 sps:$4 sm:$0xff]  }
  0xa3   :  { %805 = vmatprep.subr.bf16.mxu0 %v1897_v36  ;;  %482 = vmatprep.mubr.bf16.mxu1 %v2291_v0  ;;  %v1977_v35 = vld [vmem:[#allocation8 + $0x2b4] ss:$20 sps:$4 sm:$0xff]  }
  0xa4   :  { %835 = vmatprep.mubr.bf16.mxu0 %v2291_v0  ;;  %v1972_v36 = vld [vmem:[#allocation8 + $0x2a8] ss:$20 sps:$4 sm:$0xff]  }
  0xa5   :  { %496 = vmatpush1.bf16.msra.mxu1 %v1892_v37  ;;  %v1975_v37 = vld [vmem:[#allocation8 + $0x2b0] ss:$20 sps:$4 sm:$0xff]  }
  0xa6   :  { %806 = vmatpush1.bf16.msra.mxu0 %v1895_v38  ;;  %497 = vmatprep.subr.bf16.mxu1 %v1900_v39  ;;  %v1980_v38 = vld [vmem:[#allocation8 + $0x2d4] ss:$20 sps:$4 sm:$0xff]   ;;  %v1983_v39 = vld [vmem:[#allocation8 + $0x2dc] ss:$20 sps:$4 sm:$0xff]  }
  0xa7   :  { %807 = vmatprep.subr.bf16.mxu0 %v1903_v40  ;;  %v1978_v40 = vld [vmem:[#allocation8 + $0x2d0] ss:$20 sps:$4 sm:$0xff]  }
  0xa8   :  { %483 = vmatmul.mubr.bf16.gmra.mrb[4].mxu1 %v2456_v34 }
  0xa9   :  { %498 = vmatpush1.bf16.msra.mxu1 %v1898_v41  ;;  %525 = vmatprep.mubr.bf16.mxu1 %v2291_v0  ;;  %v1981_v41 = vld [vmem:[#allocation8 + $0x2d8] ss:$20 sps:$4 sm:$0xff]  }
  0xaa   :  { %808 = vmatpush1.bf16.msra.mxu0 %v1901_v42  ;;  %499 = vmatprep.subr.bf16.mxu1 %v1906_v43  ;;  %v1986_v42 = vld [vmem:[#allocation8 + $0x2fc] ss:$20 sps:$4 sm:$0xff]   ;;  %v1989_v43 = vld [vmem:[#allocation8 + $0x304] ss:$20 sps:$4 sm:$0xff]  }
  0xab   :  { %809 = vmatprep.subr.bf16.mxu0 %v1909_v44  ;;  %v1984_v44 = vld [vmem:[#allocation8 + $0x2f8] ss:$20 sps:$4 sm:$0xff]  }
  0xad   :  { %500 = vmatpush1.bf16.msra.mxu1 %v1904_v45  ;;  %v1987_v45 = vld [vmem:[#allocation8 + $0x300] ss:$20 sps:$4 sm:$0xff]  }
  0xae   :  { %810 = vmatpush1.bf16.msra.mxu0 %v1907_v46  ;;  %501 = vmatprep.subr.bf16.mxu1 %v1912_v47  ;;  %v1992_v46 = vld [vmem:[#allocation8 + $0x324] ss:$20 sps:$4 sm:$0xff]   ;;  %v1995_v47 = vld [vmem:[#allocation8 + $0x32c] ss:$20 sps:$4 sm:$0xff]  }
  0xaf   :  { %811 = vmatprep.subr.bf16.mxu0 %v1915_v48  ;;  %v1990_v48 = vld [vmem:[#allocation8 + $0x320] ss:$20 sps:$4 sm:$0xff]  }
  0xb1   :  { %502 = vmatpush1.bf16.msra.mxu1 %v1910_v49  ;;  %v1993_v49 = vld [vmem:[#allocation8 + $0x328] ss:$20 sps:$4 sm:$0xff]  }
  0xb2   :  { %812 = vmatpush1.bf16.msra.mxu0 %v1913_v50  ;;  %503 = vmatprep.subr.bf16.mxu1 %v1918_v51  ;;  %v1998_v50 = vld [vmem:[#allocation8 + $0x34c] ss:$20 sps:$4 sm:$0xff]   ;;  %v2001_v51 = vld [vmem:[#allocation8 + $0x354] ss:$20 sps:$4 sm:$0xff]  }
  0xb3   :  { %813 = vmatprep.subr.bf16.mxu0 %v1921_v52  ;;  %v1996_v52 = vld [vmem:[#allocation8 + $0x348] ss:$20 sps:$4 sm:$0xff]  }
  0xb5   :  { %504 = vmatpush1.bf16.msra.mxu1 %v1916_v53  ;;  %v1999_v53 = vld [vmem:[#allocation8 + $0x350] ss:$20 sps:$4 sm:$0xff]  }
  0xb6   :  { %814 = vmatpush1.bf16.msra.mxu0 %v1919_v54  ;;  %505 = vmatprep.subr.bf16.mxu1 %v1924_v55  ;;  %v2004_v54 = vld [vmem:[#allocation8 + $0x374] ss:$20 sps:$4 sm:$0xff]   ;;  %v2007_v55 = vld [vmem:[#allocation8 + $0x37c] ss:$20 sps:$4 sm:$0xff]  }
  0xb7   :  { %815 = vmatprep.subr.bf16.mxu0 %v1927_v56  ;;  %v2002_v56 = vld [vmem:[#allocation8 + $0x370] ss:$20 sps:$4 sm:$0xff]  }
  0xb9   :  { %506 = vmatpush1.bf16.msra.mxu1 %v1922_v57  ;;  %v2005_v57 = vld [vmem:[#allocation8 + $0x378] ss:$20 sps:$4 sm:$0xff]  }
  0xba   :  { %816 = vmatpush1.bf16.msra.mxu0 %v1925_v58  ;;  %507 = vmatprep.subr.bf16.mxu1 %v1930_v59  ;;  %v2010_v58 = vld [vmem:[#allocation8 + $0x39c] ss:$20 sps:$4 sm:$0xff]   ;;  %v2013_v59 = vld [vmem:[#allocation8 + $0x3a4] ss:$20 sps:$4 sm:$0xff]  }
  0xbb   :  { %817 = vmatprep.subr.bf16.mxu0 %v1933_v60  ;;  %v2008_v60 = vld [vmem:[#allocation8 + $0x398] ss:$20 sps:$4 sm:$0xff]  }
  0xbd   :  { %508 = vmatpush1.bf16.msra.mxu1 %v1928_v61  ;;  %v2011_v61 = vld [vmem:[#allocation8 + $0x3a0] ss:$20 sps:$4 sm:$0xff]  }
  0xbe   :  { %818 = vmatpush1.bf16.msra.mxu0 %v1931_v62  ;;  %856 = vmatprep.subr.bf16.mxu1 %v1936_v63  ;;  %v958_v62 = vld [vmem:[#allocation7] sm:$0xff]  ;;  %v959_v63 = vld [vmem:[#allocation7 + $0x8] sm:$0xff] }
  0xbf   :  { %1760 = vmatprep.subr.bf16.mxu0 %v1937_v3  ;;  %v962_v2 = vpack.c.bf16 %v959_v63, %v958_v62 }
  0xc0   :  { %526 = vmatmul.mubr.bf16.vlgmr.msra.gmra.mrb[8].mxu1 %v2453_v23  ;;  %v1954_v23 = vld [vmem:[#allocation8 + $0xd0] ss:$20 sps:$4 sm:$0xff]  }
  0xc1   :  { %836 = vmatmul.mubr.bf16.vlgmr.msra.gmra.mrb[4].mxu0 %v2464_v5  ;;  %857 = vmatpush1.bf16.msra.mxu1 %v1934_v4  ;;  %v960_v4 = vld [vmem:[#allocation7 + $0x10] sm:$0xff] }
  0xc2   :  { %1761 = vmatpush3.bf16.msra.mxu0 %v1937_v3  ;;  %858 = vmatprep.subr.bf16.mxu1 %v1940_v6  ;;  %v2015_v3 = vld [vmem:[#allocation8 + $0x2b8] ss:$20 sps:$4 sm:$0xff]   ;;  %v2016_v6 = vld [vmem:[#allocation8 + $0x2e0] ss:$20 sps:$4 sm:$0xff]  }
  0xc3   :  { %1762 = vmatprep.subr.bf16.mxu0 %v1941_v7  ;;  %535 = vmatprep.mubr.bf16.mxu1 %v2291_v0 }
  0xc4   :  { %845 = vmatprep.mubr.bf16.mxu0 %v2291_v0 }
  0xc5   :  { %859 = vmatpush1.bf16.msra.mxu1 %v1938_v8  ;;  %v2017_v8 = vld [vmem:[#allocation8 + $0x308] ss:$20 sps:$4 sm:$0xff]  }
  0xc6   :  { %1763 = vmatpush3.bf16.msra.mxu0 %v1941_v7  ;;  %860 = vmatprep.subr.bf16.mxu1 %v1944_v9  ;;  %v2018_v9 = vld [vmem:[#allocation8 + $0x330] ss:$20 sps:$4 sm:$0xff]  }
  0xc7   :  { %1764 = vmatprep.subr.bf16.mxu0 %v1945_v12 }
  0xc8   :  { %536 = vmatmul.mubr.bf16.gmra.mrb[12].mxu1 %v2456_v34  ;;  %v1974_v34 = vld [vmem:[#allocation8 + $0x2ac] ss:$20 sps:$4 sm:$0xff]  }
  0xc9   :  { %846 = vmatmul.mubr.bf16.gmra.mrb[8].mxu0 %v2470_v14  ;;  %861 = vmatpush1.bf16.msra.mxu1 %v1942_v13 }
  0xca   :  { %1765 = vmatpush3.bf16.msra.mxu0 %v1945_v12  ;;  %862 = vmatprep.subr.bf16.mxu1 %v1948_v15 }
  0xcb   :  { %1766 = vmatprep.subr.bf16.mxu0 %v1949_v16  ;;  %888 = vmatprep.mubr.bf16.mxu1 %v2291_v0 }
  0xcc   :  { %1776 = vmatprep.mubr.bf16.mxu0 %v2464_v5 }
  0xcd   :  { %863 = vmatpush1.bf16.msra.mxu1 %v1946_v17 }
  0xce   :  { %1767 = vmatpush3.bf16.msra.mxu0 %v1949_v16  ;;  %864 = vmatprep.subr.bf16.mxu1 %v1952_v18 }
  0xcf   :  { %1768 = vmatprep.subr.bf16.mxu0 %v1953_v19 }
  0xd1   :  { %865 = vmatpush1.bf16.msra.mxu1 %v1950_v20  ;;  %v1397_v20 = vlaneseq }
  0xd2   :  { %1769 = vmatpush3.bf16.msra.mxu0 %v1953_v19  ;;  %866 = vmatprep.subr.bf16.mxu1 %v1956_v21 }
  0xd3   :  { %1770 = vmatprep.subr.bf16.mxu0 %v1957_v22  ;;  %v2484_v21 = vshrl.u32 %v1397_v20, 7 }
  0xd5   :  { %867 = vmatpush1.bf16.msra.mxu1 %v1954_v23  ;;  %v2487_v23 = vld [vmem:[#allocation10] sm:$0x1f] }
  0xd6   :  { %1771 = vmatpush3.bf16.msra.mxu0 %v1957_v22  ;;  %868 = vmatprep.subr.bf16.mxu1 %v1960_v24  ;;  %v1411_v22 = vsub.s32 3, %v2484_v21  ;;  %v1403_v24 = vsub.s32 1, %v2484_v21 }
  0xd7   :  { %1772 = vmatprep.subr.bf16.mxu0 %v1961_v25 }
  0xd9   :  { %869 = vmatpush1.bf16.msra.mxu1 %v1958_v26  ;;  %v1412_v26 = vrot.slane %v2487_v23, %v1411_v22 }
  0xda   :  { %1773 = vmatpush3.bf16.msra.mxu0 %v1961_v25  ;;  %870 = vmatprep.subr.bf16.mxu1 %v1964_v27  ;;  %v1399_v25 = vsub.s32 0, %v2484_v21 }
  0xdb   :  { %1774 = vmatprep.subr.bf16.mxu0 %v1965_v28 }
  0xdd   :  { %871 = vmatpush1.bf16.msra.mxu1 %v1962_v29  ;;  %v1404_v29 = vrot.slane %v2487_v23, %v1403_v24 }
  0xde   :  { %1775 = vmatpush3.bf16.msra.mxu0 %v1965_v28  ;;  %1273 = vmatprep.subr.bf16.mxu1 %v1971_v31 }
  0xdf   :  { %1220 = vmatprep.subr.bf16.mxu0 %v1968_v30 }
  0xe0   :  { %889 = vmatmul.mubr.bf16.vlgmr.msra.gmra.mrb[8].mxu1 %v2464_v5  ;;  %v961_v5 = vld [vmem:[#allocation7 + $0x18] sm:$0xff] }
  0xe1   :  { %1777 = vmatmul.mubr.bf16.vlgmr.msra.gmra.mrb[0].mxu0 %v2470_v14  ;;  %1274 = vmatpush1.bf16.msra.mxu1 %v1969_v33  ;;  %v963_v7 = vpack.c.bf16 %v961_v5, %v960_v4  ;;  %v1400_v33 = vrot.slane %v2487_v23, %v1399_v25 }
  0xe2   :  { %1221 = vmatpush1.bf16.msra.mxu0 %v1966_v32  ;;  %1275 = vmatprep.subr.bf16.mxu1 %v1977_v35 }
  0xe3   :  { %1222 = vmatprep.subr.bf16.mxu0 %v1974_v34  ;;  %898 = vmatprep.mubr.bf16.mxu1 %v2291_v0 }
  0xe4   :  { %1252 = vmatprep.mubr.bf16.mxu0 %v2291_v0 }
  0xe5   :  { %1276 = vmatpush1.bf16.msra.mxu1 %v1975_v37 }
  0xe6   :  { %1223 = vmatpush1.bf16.msra.mxu0 %v1972_v36  ;;  %1277 = vmatprep.subr.bf16.mxu1 %v1983_v39 }
  0xe7   :  { %1224 = vmatprep.subr.bf16.mxu0 %v1980_v38 }
  0xe8   :  { %899 = vmatmul.mubr.bf16.gmra.mrb[12].mxu1 %v2470_v14 }
  0xe9   :  { %1278 = vmatpush1.bf16.msra.mxu1 %v1981_v41  ;;  %1305 = vmatprep.mubr.bf16.mxu1 %v2291_v0 }
  0xea   :  { %1225 = vmatpush1.bf16.msra.mxu0 %v1978_v40  ;;  %1279 = vmatprep.subr.bf16.mxu1 %v1989_v43 }
  0xeb   :  { %1226 = vmatprep.subr.bf16.mxu0 %v1986_v42 }
  0xed   :  { %1280 = vmatpush1.bf16.msra.mxu1 %v1987_v45 }
  0xee   :  { %1227 = vmatpush1.bf16.msra.mxu0 %v1984_v44  ;;  %1281 = vmatprep.subr.bf16.mxu1 %v1995_v47 }
  0xef   :  { %1228 = vmatprep.subr.bf16.mxu0 %v1992_v46 }
  0xf1   :  { %1282 = vmatpush1.bf16.msra.mxu1 %v1993_v49 }
  0xf2   :  { %1229 = vmatpush1.bf16.msra.mxu0 %v1990_v48  ;;  %1283 = vmatprep.subr.bf16.mxu1 %v2001_v51 }
  0xf3   :  { %1230 = vmatprep.subr.bf16.mxu0 %v1998_v50 }
  0xf5   :  { %1284 = vmatpush1.bf16.msra.mxu1 %v1999_v53 }
  0xf6   :  { %1231 = vmatpush1.bf16.msra.mxu0 %v1996_v52  ;;  %1285 = vmatprep.subr.bf16.mxu1 %v2007_v55 }
  0xf7   :  { %1232 = vmatprep.subr.bf16.mxu0 %v2004_v54 }
  0xf9   :  { %1286 = vmatpush1.bf16.msra.mxu1 %v2005_v57 }
  0xfa   :  { %1233 = vmatpush1.bf16.msra.mxu0 %v2002_v56  ;;  %1287 = vmatprep.subr.bf16.mxu1 %v2013_v59 }
  0xfb   :  { %1234 = vmatprep.subr.bf16.mxu0 %v2010_v58 }
  0xfd   :  { %1288 = vmatpush1.bf16.msra.mxu1 %v2011_v61 }
  0xfe   :  { %1235 = vmatpush1.bf16.msra.mxu0 %v2008_v60 }
  0xff   :  { %1780 = vmatprep.subr.bf16.mxu0 %v2014_v1 }
 0x100   :  { %1306 = vmatmul.mubr.bf16.vlgmr.msra.gmra.mrb[8].mxu1 %v962_v2 }
 0x101   :  { %1253 = vmatmul.mubr.bf16.vlgmr.msra.gmra.mrb[4].mxu0 %v962_v2  ;;  %1315 = vmatprep.mubr.bf16.mxu1 %v2291_v0 }
 0x102   :  { %1781 = vmatpush3.bf16.msra.mxu0 %v2014_v1  ;;  %1262 = vmatprep.mubr.bf16.mxu0 %v2291_v0  ;;  %v2021_v0 = vld [vmem:[#allocation8 + $0x3a8] ss:$20 sps:$4 sm:$0xff]  }
 0x103   :  { %1782 = vmatprep.subr.bf16.mxu0 %v2015_v3 }
 0x106   :  { %1783 = vmatpush3.bf16.msra.mxu0 %v2015_v3 }
 0x107   :  { %1784 = vmatprep.subr.bf16.mxu0 %v2016_v6 }
 0x108   :  { %1316 = vmatmul.mubr.bf16.gmra.mrb[12].mxu1 %v963_v7 }
 0x109   :  { %1263 = vmatmul.mubr.bf16.gmra.mrb[8].mxu0 %v963_v7 }
 0x10a   :  { %1785 = vmatpush3.bf16.msra.mxu0 %v2016_v6  ;;  %1796 = vmatprep.mubr.bf16.mxu0 %v962_v2 }
 0x10b   :  { %1786 = vmatprep.subr.bf16.mxu0 %v2017_v8 }
 0x10e   :  { %1787 = vmatpush3.bf16.msra.mxu0 %v2017_v8 }
 0x10f   :  { %1788 = vmatprep.subr.bf16.mxu0 %v2018_v9 }
 0x112   :  { %1789 = vmatpush3.bf16.msra.mxu0 %v2018_v9 }
 0x113   :  { %1790 = vmatprep.subr.bf16.mxu0 %v2019_v10 }
 0x116   :  { %1791 = vmatpush3.bf16.msra.mxu0 %v2019_v10 }
 0x117   :  { %1792 = vmatprep.subr.bf16.mxu0 %v2020_v11 }
 0x11a   :  { %1793 = vmatpush3.bf16.msra.mxu0 %v2020_v11 }
 0x11b   :  { %1794 = vmatprep.subr.bf16.mxu0 %v2021_v0 }
 0x11e   :  { %1795 = vmatpush3.bf16.msra.mxu0 %v2021_v0 }
 0x121   :  { %1797 = vmatmul.mubr.bf16.vlgmr.msra.gmra.mrb[0].mxu0 %v963_v7 }
 0x173   :  { %v474_v12 = vpop.f32.mrb[0].mxu1 }
 0x174   :  { %v476_v13 = vpop.f32.mrb[1].mxu1 }
 0x175   :  { %v478_v14 = vpop.f32.mrb[2].mxu1 }
 0x176   :  { %v480_v15 = vpop.f32.mrb[3].mxu1 }
 0x17b   :  { %v484_v16 = vpop.f32.mrb[4].mxu1 }
 0x17c   :  { %v486_v17 = vpop.f32.mrb[5].mxu1 }
 0x17d   :  { %v488_v18 = vpop.f32.mrb[6].mxu1 }
 0x17e   :  { %v490_v19 = vpop.f32.mrb[7].mxu1 }
 0x1d3   :  { %v2492_v28 = vpop.f32.mrb[8].mxu1 }
 0x1d4   :  { %v1254_v27 = vpop.f32.mrb[4].mxu0  ;;  %v1309_v32 = vpop.f32.mrb[9].mxu1 }
 0x1d5   :  { %v1800_v30 = vadd.f32 %v1254_v27, %v474_v12  ;;  %v1256_v31 = vpop.f32.mrb[5].mxu0  ;;  %v1425_v35 = vadd.f32 %v1412_v26, %v1309_v32  ;;  %v2496_v37 = vpop.f32.mrb[10].mxu1  ;;  %v1467_v27 = vld [vmem:[#allocation11 + $0x8] sm:$0xff]  ;;  %v1415_v32 = vsub.s32 4, %v2484_v21 }
 0x1d6   :  { %v1801_v34 = vadd.f32 %v1256_v31, %v476_v13  ;;  %v1258_v36 = vpop.f32.mrb[6].mxu0  ;;  %v1313_v40 = vpop.f32.mrb[11].mxu1 }
 0x1d7   :  { %v1802_v38 = vadd.f32 %v1258_v36, %v478_v14  ;;  %v1260_v39 = vpop.f32.mrb[7].mxu0  ;;  %v1470_v42 = vmul.f32 0.5, %v1425_v35  ;;  %v1430_v44 = vadd.f32 %v1412_v26, %v1313_v40  ;;  %v1422_v45 = vadd.f32 %v1800_v30, %v1400_v33  ;;  %v1466_v14 = vld [vmem:[#allocation11] sm:$0xff]  ;;  %v1468_v40 = vld [vmem:[#allocation11 + $0x10] sm:$0xff] }
 0x1d8   :  { %v1423_v41 = vadd.f32 %v1801_v34, %v1404_v29  ;;  %v1803_v43 = vadd.f32 %v1260_v39, %v480_v15 }
 0x1d9   :  { %2022 = vtanh.f32 %v1470_v42  ;;  %v1471_v49 = vmul.f32 0.5, %v1430_v44  ;;  %v1427_v55 = vadd.f32 %v1802_v38, %v1400_v33 }
 0x1da   :  { %v1446_v46 = vmul.f32 0.5, %v1423_v41  ;;  %v1428_v47 = vadd.f32 %v1803_v43, %v1404_v29 }
 0x1db   :  { %v2498_v51 = vpop.f32.mrb[12].mxu1 }
 0x1dc   :  { %2024 = vtanh.f32 %v1446_v46  ;;  %v1447_v48 = vmul.f32 0.5, %v1428_v47  ;;  %v1264_v50 = vpop.f32.mrb[8].mxu0  ;;  %v1319_v54 = vpop.f32.mrb[13].mxu1 }
 0x1dd   :  { %v1804_v52 = vadd.f32 %v1264_v50, %v484_v16  ;;  %v1266_v53 = vpop.f32.mrb[9].mxu0  ;;  %2026 = vtanh.f32 %v1422_v45  ;;  %v1435_v57 = vadd.f32 %v1412_v26, %v1319_v54  ;;  %v2500_v59 = vpop.f32.mrb[14].mxu1  ;;  %v1416_v45 = vrot.slane %v2487_v23, %v1415_v32  ;;  %v1495_v32 = vld [vmem:[#allocation13 + $0x8] sm:$0xff] }
 0x1de   :  { %v1805_v56 = vadd.f32 %v1266_v53, %v486_v17  ;;  %v1268_v58 = vpop.f32.mrb[10].mxu0  ;;  %2028 = vtanh.f32 %v1447_v48  ;;  %v1323_v62 = vpop.f32.mrb[15].mxu1  ;;  %v1469_v53 = vld [vmem:[#allocation11 + $0x18] sm:$0xff] }
 0x1df   :  { %v1806_v60 = vadd.f32 %v1268_v58, %v488_v18  ;;  %v1270_v61 = vpop.f32.mrb[11].mxu0  ;;  %2030 = vtanh.f32 %v1471_v49  ;;  %v1472_v1 = vmul.f32 0.5, %v1435_v57  ;;  %v1440_v3 = vadd.f32 %v1412_v26, %v1323_v62 }
 0x1e0   :  { %v1433_v63 = vadd.f32 %v1805_v56, %v1404_v29  ;;  %v1807_v2 = vadd.f32 %v1270_v61, %v490_v19  ;;  %2032 = vtanh.f32 %v1427_v55  ;;  %v1432_v4 = vadd.f32 %v1804_v52, %v1400_v33 }
 0x1e1   :  { %2034 = vtanh.f32 %v1472_v1  ;;  %v1473_v7 = vmul.f32 0.5, %v1440_v3  ;;  %v1437_v12 = vadd.f32 %v1806_v60, %v1400_v33  ;;  %v1407_v56 = vsub.s32 2, %v2484_v21 }
 0x1e2   :  { %v1448_v5 = vmul.f32 0.5, %v1433_v63  ;;  %v1438_v6 = vadd.f32 %v1807_v2, %v1404_v29 }
 0x1e3   :  { %v2023_v8 = vpop.eup %2022 }
 0x1e4   :  { %2036 = vtanh.f32 %v1448_v5  ;;  %v1449_v9 = vmul.f32 0.5, %v1438_v6  ;;  %v1478_v11 = vmul.f32 0.5, %v2023_v8  ;;  %v1408_v8 = vrot.slane %v2487_v23, %v1407_v56 }
 0x1e5   :  { %2038 = vtanh.f32 %v1432_v4 }
 0x1e6   :  { %v2025_v10 = vpop.eup %2024  ;;  %2040 = vtanh.f32 %v1449_v9  ;;  %v1482_v15 = vadd.f32 0.5, %v1478_v11  ;;  %v1434_v11 = vadd.f32 %v1408_v8, %v2498_v51 }
 0x1e7   :  { %v1454_v0 = vmul.f32 0.5, %v2025_v10  ;;  %v2027_v13 = vpop.eup %2026  ;;  %2042 = vtanh.f32 %v1473_v7 }
 0x1e8   :  { %v2029_v16 = vpop.eup %2028  ;;  %v1486_v22 = vmul.f32 %v1482_v15, %v1466_v14  ;;  %2044 = vtanh.f32 %v1437_v12  ;;  %v1439_v12 = vadd.f32 %v1408_v8, %v2500_v59  ;;  %v1524_v14 = vmul.f32 0.5, %v1434_v11 }
 0x1e9   :  { %v1458_v17 = vadd.f32 0.5, %v1454_v0  ;;  %v2031_v18 = vpop.eup %2030  ;;  %v1455_v19 = vmul.f32 0.5, %v2029_v16  ;;  %v1424_v0 = vadd.f32 %v1408_v8, %v2492_v28  ;;  %v1494_v28 = vld [vmem:[#allocation13] sm:$0xff] }
 0x1ea   :  { %v1479_v24 = vmul.f32 0.5, %v2031_v18  ;;  %v2033_v25 = vpop.eup %2032  ;;  %v1525_v16 = vmul.f32 0.5, %v1439_v12 }
 0x1eb   :  { %v1462_v20 = vmul.f32 %v2027_v13, %v1458_v17  ;;  %v1459_v26 = vadd.f32 0.5, %v1455_v19  ;;  %v2035_v29 = vpop.eup %2034  ;;  %v1429_v13 = vadd.f32 %v1408_v8, %v2496_v37  ;;  %v1522_v15 = vmul.f32 0.5, %v1424_v0  ;;  %v1497_v37 = vld [vmem:[#allocation13 + $0x18] sm:$0xff] }
 0x1ec   :  { %v1483_v31 = vadd.f32 0.5, %v1479_v24  ;;  %v1480_v35 = vmul.f32 0.5, %v2035_v29 }
 0x1ed   :  { %v2502_v30 = vadd.f32 %v1486_v22, %v1462_v20  ;;  %v1463_v34 = vmul.f32 %v2033_v25, %v1459_v26  ;;  %v1523_v23 = vmul.f32 0.5, %v1429_v13  ;;  %v1496_v22 = vld [vmem:[#allocation13 + $0x10] sm:$0xff] }
 0x1ee   :  { %v2037_v33 = vpop.eup %2036  ;;  %v1487_v36 = vmul.f32 %v1483_v31, %v1467_v27  ;;  %v1484_v41 = vadd.f32 0.5, %v1480_v35 }
 0x1ef   :  { %v1456_v38 = vmul.f32 0.5, %v2037_v33  ;;  %v2039_v39 = vpop.eup %2038 }
 0x1f0   :  { %v2041_v42 = vpop.eup %2040  ;;  %v2505_v43 = vadd.f32 %v1487_v36, %v1463_v34  ;;  %v1488_v49 = vmul.f32 %v1484_v41, %v1468_v40 }
 0x1f1   :  { %v1460_v44 = vadd.f32 0.5, %v1456_v38  ;;  %v2043_v46 = vpop.eup %2042  ;;  %v1457_v47 = vmul.f32 0.5, %v2041_v42 }
 0x1f2   :  { %v1481_v50 = vmul.f32 0.5, %v2043_v46  ;;  %v2045_v55 = vpop.eup %2044 }
 0x1f3   :  { %v1464_v48 = vmul.f32 %v2039_v39, %v1460_v44  ;;  %v1461_v52 = vadd.f32 0.5, %v1457_v47 }
 0x1f4   :  { %v1798_v54 = vpop.f32.mrb[0].mxu0  ;;  %v1485_v58 = vadd.f32 0.5, %v1481_v50 }
 0x1f5   :  { %v1492_v57 = vadd.f32 %v1488_v49, %v1464_v48  ;;  %v1436_v60 = vadd.f32 %v1798_v54, %v1416_v45  ;;  %v1360_v61 = vpop.f32.mrb[1].mxu0  ;;  %v1465_v62 = vmul.f32 %v2045_v55, %v1461_v52 }
 0x1f6   :  { %v1426_v63 = vadd.f32 %v1416_v45, %v1360_v61  ;;  %v1799_v1 = vpop.f32.mrb[2].mxu0  ;;  %v1489_v2 = vmul.f32 %v1485_v58, %v1469_v53 }
 0x1f7   :  { %v1500_v3 = vmul.f32 0.5, %v1436_v60  ;;  %v1441_v4 = vadd.f32 %v1799_v1, %v1416_v45  ;;  %v1363_v5 = vpop.f32.mrb[3].mxu0 }
 0x1f8   :  { %v1498_v6 = vmul.f32 0.5, %v1426_v63  ;;  %v1431_v7 = vadd.f32 %v1416_v45, %v1363_v5  ;;  %v1493_v9 = vadd.f32 %v1489_v2, %v1465_v62 }
 0x1f9   :  { %2046 = vtanh.f32 %v1500_v3  ;;  %v1501_v10 = vmul.f32 0.5, %v1441_v4 }
 0x1fa   :  { %2048 = vtanh.f32 %v1498_v6  ;;  %v1499_v21 = vmul.f32 0.5, %v1431_v7 }
 0x1fb   :  { %2050 = vtanh.f32 %v1501_v10 }
 0x1fc   :  { %2052 = vtanh.f32 %v1499_v21 }
 0x1fd   :  { %2054 = vtanh.f32 %v1524_v14 }
 0x1fe   :  { %2056 = vtanh.f32 %v1522_v15 }
 0x1ff   :  { %2058 = vtanh.f32 %v1525_v16 }
 0x200   :  { %2060 = vtanh.f32 %v1523_v23 }
 0x203   :  { %v2047_v17 = vpop.eup %2046 }
 0x204   :  { %v2049_v18 = vpop.eup %2048  ;;  %v1508_v19 = vmul.f32 0.5, %v2047_v17 }
 0x205   :  { %v2051_v20 = vpop.eup %2050  ;;  %v1506_v24 = vmul.f32 0.5, %v2049_v18 }
 0x206   :  { %v2053_v51 = vpop.eup %2052  ;;  %v1512_v25 = vadd.f32 0.5, %v1508_v19  ;;  %v1509_v26 = vmul.f32 0.5, %v2051_v20 }
 0x207   :  { %v1510_v59 = vadd.f32 0.5, %v1506_v24  ;;  %v1507_v27 = vmul.f32 0.5, %v2053_v51  ;;  %v2055_v42 = vpop.eup %2054 }
 0x208   :  { %v1516_v29 = vmul.f32 %v1512_v25, %v1496_v22  ;;  %v1513_v31 = vadd.f32 0.5, %v1509_v26  ;;  %v2057_v44 = vpop.eup %2056 }
 0x209   :  { %v1514_v33 = vmul.f32 %v1510_v59, %v1494_v28  ;;  %v1511_v34 = vadd.f32 0.5, %v1507_v27  ;;  %v2059_v45 = vpop.eup %2058 }
 0x20a   :  { %v1520_v35 = vadd.f32 %v1516_v29, %v1492_v57  ;;  %v1517_v36 = vmul.f32 %v1513_v31, %v1497_v37 }
 0x20b   :  { %v1518_v38 = vadd.f32 %v1514_v33, %v2502_v30  ;;  %v1515_v39 = vmul.f32 %v1511_v34, %v1495_v32 }
 0x20c   :  { %2062 = vtanh.f32 %v1520_v35  ;;  %1552 = vst [vmem:[#allocation15 + $0x10] sm:$0xff] %v1520_v35  ;;  %v1521_v40 = vadd.f32 %v1517_v36, %v1493_v9 }
 0x20d   :  { %2064 = vtanh.f32 %v1518_v38  ;;  %1550 = vst [vmem:[#allocation15] sm:$0xff] %v1518_v38  ;;  %v1519_v41 = vadd.f32 %v1515_v39, %v2505_v43 }
 0x20e   :  { %2066 = vtanh.f32 %v1521_v40  ;;  %1553 = vst [vmem:[#allocation15 + $0x18] sm:$0xff] %v1521_v40 }
 0x20f   :  { %2068 = vtanh.f32 %v1519_v41  ;;  %1551 = vst [vmem:[#allocation15 + $0x8] sm:$0xff] %v1519_v41 }
 0x210   :  { %2235 = shalt.err (!%p2232_p4)
}
 0x211   :  { %s2236_s26 = scalar_lea.hbm %s2554_s8, 512 }
 0x212   :  { %p2237_p5 = scmp.ne.s32.totalorder %s2554_s8, %s2236_s26  ;;  %p2240_p6 = scmp.lt.u32.totalorder %s2236_s26, %s2554_s8 }
 0x214   :  { %p2242_p7 = pnand %p2240_p6, %p2237_p5 }
 0x216   :  { %2245 = shalt.err (!%p2242_p7)
}
 0x217   :  { %1577 = dma.vmem_to_hbm [thread:$0]  %s1572_s0, 512, %s2554_s8, [#allocation16], %s2282_s17, %s2282_s17, %s2283_s18   ;;  %v2061_v30 = vpop.eup %2060  ;;  %v1532_v43 = vmul.f32 0.5, %v2055_v42  ;;  %v1530_v46 = vmul.f32 0.5, %v2057_v44  ;;  %v1533_v47 = vmul.f32 0.5, %v2059_v45 }
 0x218   :  { %v1531_v48 = vmul.f32 0.5, %v2061_v30  ;;  %v2063_v50 = vpop.eup %2062  ;;  %s2293_s5 = smov [#allocation14]  }
 0x219   :  { %v1536_v49 = vadd.f32 0.5, %v1532_v43  ;;  %v1534_v52 = vadd.f32 0.5, %v1530_v46  ;;  %v2065_v53 = vpop.eup %2064  ;;  %v1537_v54 = vadd.f32 0.5, %v1533_v47  ;;  %s1559_s2 = sshll.u32 %s2293_s5, 4  ;;  %s1560_s2 = int_to_ptr.vmem [resolvable:$true] %s1559_s2 }
 0x21a   :  { %v2067_v56 = vpop.eup %2066  ;;  %v1535_v57 = vadd.f32 0.5, %v1531_v48  ;;  %s2246_s8 = scalar_lea.vmem %s1560_s2, 512  ;;  %p2251_p9 = scmp.lt.s32.totalorder %s1560_s2, %s1560_s2 }
 0x21b   :  { %v1544_v55 = vmul.f32 %v2063_v50, %v1536_v49  ;;  %v1542_v58 = vmul.f32 %v2065_v53, %v1534_v52  ;;  %v2069_v60 = vpop.eup %2068  ;;  %v1545_v61 = vmul.f32 %v2067_v56, %v1537_v54  ;;  %p2247_p8 = scmp.ne.s32.totalorder %s1560_s2, %s2246_s8  ;;  %p2252_p10 = scmp.lt.s32.totalorder %s2246_s8, %s2246_s8 }
 0x21c   :  { %v1543_v62 = vmul.f32 %v2069_v60, %v1535_v57 }
 0x21d   :  { %1548 = vst [vmem:[#allocation14 + $0x10] sm:$0xff] %v1544_v55  ;;  %1546 = vst [vmem:[#allocation14] sm:$0xff] %v1542_v58  ;;  %p2253_p11 = por %p2252_p10, %p2251_p9 }
 0x21e   :  { %1549 = vst [vmem:[#allocation14 + $0x18] sm:$0xff] %v1545_v61  ;;  %1547 = vst [vmem:[#allocation14 + $0x8] sm:$0xff] %v1543_v62 }
 0x21f   :  { %p2254_p12 = pnand %p2253_p11, %p2247_p8 }
 0x221   :  { %2257 = shalt.err (!%p2254_p12)
}
 0x222   :  { %s2258_s13 = scalar_lea.hbm %s2553_s7, 512 }
 0x223   :  { %p2259_p13 = scmp.ne.s32.totalorder %s2553_s7, %s2258_s13  ;;  %p2262_p0 = scmp.lt.u32.totalorder %s2258_s13, %s2553_s7 }
 0x225   :  { %p2264_p1 = pnand %p2262_p0, %p2259_p13 }
 0x227   :  { %2267 = shalt.err (!%p2264_p1)
}
 0x228   :  { %1565 = dma.vmem_to_hbm [thread:$0]  %s1560_s2, 512, %s2553_s7, [#allocation4], %s2282_s17, %s2282_s17, %s2283_s18  }
 0x229   :  { %2276 = dma.done.wait [#allocation4], 512  }
 0x22a   :  { %2277 = vsyncadd [#allocation4], 4294966784 }
 0x22b   :  { %2278 = dma.done.wait [#allocation16], 512  }
 0x22c   :  { %2279 = vsyncadd [#allocation16], 4294966784 }
 0x22d   :  { %1584 = vsyncpa [#allocation3], 1 }
 0x22e   :  { %1585 = vsyncpa [#allocation6], 1 }
 0x22f   :  { %1586 = vsyncpa [#allocation9], 1 }
 0x230   :  { %1587 = vsyncpa [#allocation12], 1 }
 0x231   :  { %1588 = vsyncpa [#allocation4], 1 }
 0x232   :  { %1589 = vsyncpa [#allocation16], 1 }

</bundles_post_ra>
